<compile_context>
chip_gen: v7x
topology: tpu7x:2x2x1
jax: 0.10.0
libtpu: 0.0.40
codegen_flags: <defaults>
</compile_context>

<pallas_src>
import math

import jax
import jax.numpy as jnp
from jax.experimental import pallas as pl
from jax.experimental.pallas import tpu as pltpu


def _round_up(x, m):
    return (x + m - 1) // m * m


def _mog_logprob_kernel(z_ref, rhs_a_ref, rhs_b_ref, bias_ref, out_ref):
    """One batch tile: s = rhs_a @ (z*z)^T + rhs_b @ z^T + bias ; logsumexp over K (sublanes)."""
    z = z_ref[...]                        # (TB, M)       f32
    rhs_a = rhs_a_ref[...]                # (K8, M)  = -0.5 * inv_var      (padded rows are 0)
    rhs_b = rhs_b_ref[...]                # (K8, M)  = mu * inv_var        (padded rows are 0)
    bias = bias_ref[...]                  # (K8, 1)  fused log_w - log_det - 0.5*mu^2*iv - const

    # Two MXU pushes, contraction on M (q@k.T orientation: large operand is the
    # transposed rhs, natively supported). Result lives with K on sublanes.
    s = jax.lax.dot_general(
        rhs_a, z * z,
        dimension_numbers=(((1,), (1,)), ((), ())),
        preferred_element_type=jnp.float32)                          # (K8, TB)
    s = s + jax.lax.dot_general(
        rhs_b, z,
        dimension_numbers=(((1,), (1,)), ((), ())),
        preferred_element_type=jnp.float32)                          # (K8, TB)
    s = s + bias                                                     # (K8, TB)

    # logsumexp over the component (sublane) axis -> lane-dense (1, TB) result.
    m = jnp.max(s, axis=0, keepdims=True)                            # (1, TB)
    lp = m + jnp.log(jnp.sum(jnp.exp(s - m), axis=0, keepdims=True))
    out_ref[...] = lp                                                # (1, TB)


def _pick_batch_tile(B, M, K_pad, block_rows):
    """Pick a batch tile size: big enough to amortize per-step overhead, VMEM-safe,
    and (for large B) at least 2 tiles so the batch can shard across v7x's 2 TCs."""
    B8 = _round_up(B, 8)
    # Conservative per-row in-flight f32 bytes (z double-buffer, z*z temp,
    # (K_pad, tb) score matrix + epilogue temporaries, lane-dense output dbl-buffer).
    bytes_per_row = 4 * (2 * M + M + 6 * K_pad + 2)
    budget = 24 * 1024 * 1024          # fits comfortably under v7x's 64 MiB VMEM
    cap = max(128, (budget // bytes_per_row) // 128 * 128)
    tb = min(_round_up(block_rows, 128), cap)
    # Keep >= 2 tiles when B is large so dimension_semantics=("parallel",) can
    # actually split batch tiles across TensorCores (v7x); no-op for v5e/v6e.
    if B8 > 256:
        tb = min(tb, _round_up(pl.cdiv(B8, 2), 128))
    if B8 <= tb:
        tb = B8                        # single tile; block == full array (layout-legal)
    B_pad = _round_up(B8, tb)
    return tb, B_pad, bytes_per_row


def mog_prior_log_prob(z, logits, means, log_stds, *, block_rows=8192):
    """Evaluate log p(z) under the MoG prior with a batch-tiled Pallas kernel."""
    z = jnp.asarray(z, jnp.float32)
    logits = jnp.asarray(logits, jnp.float32)
    means = jnp.asarray(means, jnp.float32)
    log_stds = jnp.asarray(log_stds, jnp.float32)

    assert z.ndim == 2, "z must be (B, M)"
    B, M = z.shape
    assert logits.ndim == 1, "logits must be 1-D of shape (K,)"
    K = logits.shape[0]
    assert means.shape == (K, M) and log_stds.shape == (K, M)

    # ----- parameter-only math: done once, hoisted out of the per-tile body -----
    log_w = jax.nn.log_softmax(logits)                               # (K,)
    inv_var = jnp.exp(-2.0 * log_stds)                               # (K, M)
    mu_iv = means * inv_var                                          # (K, M)
    bias = (log_w
            - jnp.sum(log_stds, axis=-1)
            - 0.5 * jnp.sum(means * mu_iv, axis=-1)
            - 0.5 * M * math.log(2.0 * math.pi))                     # (K,)
    rhs_a = -0.5 * inv_var                                           # -0.5 folded here (not per tile)
    rhs_b = mu_iv

    # ----- pad K to a multiple of 8 SUBLANES (padded comps can never win) -----
    K_pad = _round_up(max(K, 8), 8)
    rhs_a = jnp.pad(rhs_a, ((0, K_pad - K), (0, 0)))
    rhs_b = jnp.pad(rhs_b, ((0, K_pad - K), (0, 0)))
    bias = jnp.pad(bias, (0, K_pad - K), constant_values=-1e30).reshape(K_pad, 1)

    # ----- batch tiling -----
    tb, B_pad, bytes_per_row = _pick_batch_tile(B, M, K_pad, block_rows)
    if B_pad != B:
        z = jnp.pad(z, ((0, B_pad - B), (0, 0)))

    vmem_limit = int(min(48 * 1024 * 1024,
                         max(16 * 1024 * 1024, 2 * bytes_per_row * tb)))

    out = pl.pallas_call(
        _mog_logprob_kernel,
        out_shape=jax.ShapeDtypeStruct((1, B_pad), jnp.float32),
        grid_spec=pltpu.PrefetchScalarGridSpec(
            num_scalar_prefetch=0,
            grid=(B_pad // tb,),
            in_specs=[
                pl.BlockSpec((tb, M), lambda i: (i, 0)),             # z: streamed + pipelined
                pl.BlockSpec((K_pad, M), lambda i: (0, 0)),          # resident -0.5*inv_var
                pl.BlockSpec((K_pad, M), lambda i: (0, 0)),          # resident mu*inv_var
                pl.BlockSpec((K_pad, 1), lambda i: (0, 0)),          # resident fused bias
            ],
            out_specs=pl.BlockSpec((1, tb), lambda i: (0, i)),       # lane-dense output
        ),
        compiler_params=pltpu.CompilerParams(
            dimension_semantics=("parallel",),                        # shard tiles across TCs (v7x)
            vmem_limit_bytes=vmem_limit,
        ),
    )(z, rhs_a, rhs_b, bias)
    return out[0, :B]


def _reference_log_prob(z, logits, means, log_stds):
    """Pure-JAX reference matching torch.distributions semantics."""
    M = z.shape[-1]
    log_w = jax.nn.log_softmax(logits)                                # (K,)
    inv_var = jnp.exp(-2.0 * log_stds)                                # (K, M)
    diff = z[:, None, :] - means[None, :, :]                          # (B, K, M)
    comp = (
        -0.5 * jnp.sum(diff * diff * inv_var[None], axis=-1)
        - jnp.sum(log_stds, axis=-1)[None, :]
        - 0.5 * M * jnp.log(2.0 * jnp.pi)
    )                                                                 # (B, K)
    return jax.nn.logsumexp(comp + log_w[None, :], axis=-1)          # (B,)


if __name__ == "__main__":
    M, K = 32, 4

    key = jax.random.PRNGKey(0)
    k_logits, k_means, k_z1, k_z2 = jax.random.split(key, 4)

    # Deterministic parameter init mirroring MoGPrior.__init__:
    logits = jax.random.normal(k_logits, (K,), dtype=jnp.float32)          # randn(K)
    means = jax.random.normal(k_means, (K, M), dtype=jnp.float32) * 0.01   # randn(K,M)*0.01
    log_stds = jnp.full((K, M), -2.0, dtype=jnp.float32)                   # ones(K,M)*-2

    # Small primary check (single tile, block == full array).
    z = jax.random.normal(k_z1, (8, M), dtype=jnp.float32)
    lp = mog_prior_log_prob(z, logits, means, log_stds)
    jax.block_until_ready(lp)
    ref = _reference_log_prob(z, logits, means, log_stds)
    assert lp.shape == (8,)
    assert jnp.allclose(lp, ref, atol=1e-4, rtol=1e-4), (lp, ref)

    # Multi-tile check: exercises the batch grid, pipelining, lane-dense output
    # blocks, and row padding (tb=128 -> B_pad=256, grid=2).
    z2 = jax.random.normal(k_z2, (200, M), dtype=jnp.float32)
    lp2 = mog_prior_log_prob(z2, logits, means, log_stds, block_rows=128)
    jax.block_until_ready(lp2)
    ref2 = _reference_log_prob(z2, logits, means, log_stds)
    assert lp2.shape == (200,)
    assert jnp.allclose(lp2, ref2, atol=1e-4, rtol=1e-4), (lp2, ref2)

    # TODO(synk): forward() returns a Distribution object; .sample() (Gumbel/Categorical
    # draw + Normal reparameterization) is not kernelized — only the log_prob hot path.
    print("KERNEL_OK")
</pallas_src>

<mosaic_0001>
module attributes {stable_mosaic.version = 11 : i64} {
  func.func @_mog_logprob_kernel(%arg0: i32, %arg1: memref<8x32xf32, #tpu.memory_space<vmem>>, %arg2: memref<8x32xf32, #tpu.memory_space<vmem>>, %arg3: memref<8x32xf32, #tpu.memory_space<vmem>>, %arg4: memref<8x1xf32, #tpu.memory_space<vmem>>, %arg5: memref<1x8xf32, #tpu.memory_space<vmem>>) attributes {dimension_semantics = [#tpu.dimension_semantics<parallel>], iteration_bounds = array<i64: 1>, scalar_prefetch = 0 : i64, scratch_operands = 0 : i64, tpu.core_type = #tpu.core_type<tc>, window_params = [{transform_indices = @transform_0, window_bounds = array<i64: 8, 32>}, {pipeline_mode = #tpu.pipeline_mode<synchronous>, transform_indices = @transform_1, window_bounds = array<i64: 8, 32>}, {pipeline_mode = #tpu.pipeline_mode<synchronous>, transform_indices = @transform_2, window_bounds = array<i64: 8, 32>}, {pipeline_mode = #tpu.pipeline_mode<synchronous>, transform_indices = @transform_3, window_bounds = array<i64: 8, 1>}, {transform_indices = @transform_4, window_bounds = array<i64: 1, 8>}]} {
    %c0 = arith.constant 0 : index
    %c0_0 = arith.constant 0 : index
    %0 = vector.load %arg1[%c0, %c0_0] : memref<8x32xf32, #tpu.memory_space<vmem>>, vector<8x32xf32>
    %c0_1 = arith.constant 0 : index
    %c0_2 = arith.constant 0 : index
    %1 = vector.load %arg2[%c0_1, %c0_2] : memref<8x32xf32, #tpu.memory_space<vmem>>, vector<8x32xf32>
    %c0_3 = arith.constant 0 : index
    %c0_4 = arith.constant 0 : index
    %2 = vector.load %arg3[%c0_3, %c0_4] : memref<8x32xf32, #tpu.memory_space<vmem>>, vector<8x32xf32>
    %c0_5 = arith.constant 0 : index
    %c0_6 = arith.constant 0 : index
    %3 = vector.load %arg4[%c0_5, %c0_6] : memref<8x1xf32, #tpu.memory_space<vmem>>, vector<8x1xf32>
    %4 = arith.mulf %0, %0 : vector<8x32xf32>
    %cst = arith.constant dense<0.000000e+00> : vector<8x8xf32>
    %5 = tpu.matmul %1, %4, %cst {dimension_numbers = #tpu.dot_dimension_numbers<[1], [1], [0], [0], [0, 0, 1, 0], [], []>} : vector<8x32xf32>, vector<8x32xf32>, vector<8x8xf32> -> vector<8x8xf32>
    %cst_7 = arith.constant dense<0.000000e+00> : vector<8x8xf32>
    %6 = tpu.matmul %2, %0, %cst_7 {dimension_numbers = #tpu.dot_dimension_numbers<[1], [1], [0], [0], [0, 0, 1, 0], [], []>} : vector<8x32xf32>, vector<8x32xf32>, vector<8x8xf32> -> vector<8x8xf32>
    %7 = arith.addf %5, %6 : vector<8x8xf32>
    %8 = vector.broadcast %3 : vector<8x1xf32> to vector<8x8xf32>
    %9 = arith.addf %7, %8 : vector<8x8xf32>
    %cst_8 = arith.constant dense<0xFF800000> : vector<8xf32>
    %10 = vector.multi_reduction <maximumf>, %9, %cst_8 [0] : vector<8x8xf32> to vector<8xf32>
    %11 = vector.shape_cast %10 : vector<8xf32> to vector<1x8xf32>
    %12 = vector.broadcast %11 : vector<1x8xf32> to vector<8x8xf32>
    %13 = arith.subf %9, %12 : vector<8x8xf32>
    %14 = math.exp %13 : vector<8x8xf32>
    %cst_9 = arith.constant dense<0.000000e+00> : vector<8xf32>
    %15 = vector.multi_reduction <add>, %14, %cst_9 [0] : vector<8x8xf32> to vector<8xf32>
    %16 = vector.shape_cast %15 : vector<8xf32> to vector<1x8xf32>
    %17 = math.log %16 : vector<1x8xf32>
    %18 = arith.addf %11, %17 : vector<1x8xf32>
    %c0_10 = arith.constant 0 : index
    %c0_11 = arith.constant 0 : index
    %19 = vector.load %arg5[%c0_10, %c0_11] : memref<1x8xf32, #tpu.memory_space<vmem>>, vector<1x8xf32>
    tpu.vector_store %arg5[%c0_10, %c0_11], %18 {strides = array<i32>} : memref<1x8xf32, #tpu.memory_space<vmem>>, vector<1x8xf32>,
    return
  }
  func.func @transform_0(%arg0: i32) -> (i32, i32) {
    %c0_i32 = arith.constant 0 : i32
    %c0_i32_0 = arith.constant 0 : i32
    return %arg0, %c0_i32 : i32, i32
  }
  func.func @transform_1(%arg0: i32) -> (i32, i32) {
    %c0_i32 = arith.constant 0 : i32
    %c0_i32_0 = arith.constant 0 : i32
    %c0_i32_1 = arith.constant 0 : i32
    return %c0_i32, %c0_i32_0 : i32, i32
  }
  func.func @transform_2(%arg0: i32) -> (i32, i32) {
    %c0_i32 = arith.constant 0 : i32
    %c0_i32_0 = arith.constant 0 : i32
    %c0_i32_1 = arith.constant 0 : i32
    return %c0_i32, %c0_i32_0 : i32, i32
  }
  func.func @transform_3(%arg0: i32) -> (i32, i32) {
    %c0_i32 = arith.constant 0 : i32
    %c0_i32_0 = arith.constant 0 : i32
    %c0_i32_1 = arith.constant 0 : i32
    return %c0_i32, %c0_i32_0 : i32, i32
  }
  func.func @transform_4(%arg0: i32) -> (i32, i32) {
    %c0_i32 = arith.constant 0 : i32
    %c0_i32_0 = arith.constant 0 : i32
    return %c0_i32, %arg0 : i32, i32
  }
}

</mosaic_0001>

<bundles_post_ra>
// kernel: tpu_custom_call.1
= control target key start
LH: loop header
LB: loop body
LE: loop exit
PB: predicated region body
PF: predicated region fallthrough
CT: control target
= control target key end

     0   :  { %9 = vsyncpa [#allocation3], 0  ;;  %s371_s0 = inlined_call_operand.vmem [shape: f32[8,32], index: 0, kind: input, shape index: {}]   ;;  %s372_s1 = inlined_call_operand.hbm [shape: f32[8,32], index: 1, kind: input, shape index: {}]   ;;  %s373_s2 = inlined_call_operand.vmem [shape: f32[8,32], index: 2, kind: input, shape index: {}]   ;;  %s374_s3 = inlined_call_operand.vmem [shape: f32[8,1], index: 3, kind: input, shape index: {}]   ;;  %s375_s4 = inlined_call_operand.hbm [shape: f32[1,8], index: 4, kind: output, shape index: {}]  }
   0x1   :  { %10 = vsyncpa [#allocation4], 0  ;;  %s308_s15 = smov [#allocation2]   ;;  %s260_s19 = scalar_lea.hbm %s372_s1, 128 }
   0x2   :  { %s19_s16 = sshll.u32 %s308_s15, 4  ;;  %p261_p0 = scmp.ne.s32.totalorder %s372_s1, %s260_s19  ;;  %s20_s16 = int_to_ptr.vmem [resolvable:$true] %s19_s16 }
   0x3   :  { %p264_p1 = scmp.lt.u32.totalorder %s260_s19, %s372_s1 }
   0x5   :  { %p266_p2 = pnand %p264_p1, %p261_p0 }
   0x7   :  { %269 = shalt.err (!%p266_p2)
}
   0x8   :  { %s270_s24 = scalar_lea.vmem %s20_s16, 128  ;;  %p275_p4 = scmp.lt.s32.totalorder %s20_s16, %s20_s16 }
   0x9   :  { %p271_p3 = scmp.ne.s32.totalorder %s20_s16, %s270_s24  ;;  %p276_p5 = scmp.lt.s32.totalorder %s270_s24, %s270_s24 }
   0xb   :  { %p277_p6 = por %p276_p5, %p275_p4 }
   0xd   :  { %p278_p7 = pnand %p277_p6, %p271_p3 }
   0xf   :  { %281 = shalt.err (!%p278_p7)
}
  0x10   :  { %22 = dma.hbm_to_vmem [thread:$0]  %s372_s1, 128, %s20_s16, [#allocation3]  }
  0x11   :  { %304 = dma.done.wait [#allocation3], 128  }
  0x12   :  { %305 = vsyncadd [#allocation3], 4294967168  ;;  %v309_v0 = vmov 0.0   ;;  %vm310_vm0 = vmmov 0   ;;  %v311_v1 = vmov 0   ;;  %vm35_vm1 = vcmask 261120  }
  0x13   :  { %240 = vmatprep.subr.mxu0 %v309_v0  ;;  %245 = vmatprep.subr.mxu1 %v309_v0  ;;  %v30_v2 = vld [vmem:[%s371_s0] sm:$0xff]  ;;  %vm194_vm2 = vcmask 64512   ;;  %s312_s0 = smov [#allocation5]   ;;  %vm215_vm3 = vcmask 57344  }
  0x14   :  { %242 = vmatprep.mubr.msk.f32.mxu0 %vm310_vm0, %v309_v0  ;;  %247 = vmatprep.mubr.msk.f32.mxu1 %vm310_vm0, %v309_v0  ;;  %v34_v3 = vmul.f32 %v30_v2, %v30_v2  ;;  %v32_v4 = vld [vmem:[%s373_s2] sm:$0xff]  ;;  %s223_s2 = sshll.u32 %s312_s0, 4  ;;  %s224_s2 = int_to_ptr.vmem [resolvable:$true] %s223_s2 }
  0x15   :  { %255 = vset.pattern.permute.xlu0 %v311_v1  ;;  %241 = vmatpush3.xpose.msk.msra.mxu0 %vm35_vm1, %v30_v2  ;;  %v33_v5 = vld [vmem:[%s374_s3] sm:$0xff]  ;;  %s282_s3 = scalar_lea.vmem %s224_s2, 16  ;;  %s286_s6 = scalar_lea.vmem %s224_s2, 32 }
  0x16   :  { %190 = vperm.xlu0 %255, %v33_v5   ;;  %246 = vmatpush3.xpose.msk.msra.mxu1 %vm35_vm1, %v34_v3  ;;  %v31_v6 = vld [vmem:[#allocation2] sm:$0xff]  ;;  %p283_p8 = scmp.ne.s32.totalorder %s224_s2, %s282_s3  ;;  %p287_p9 = scmp.lt.s32.totalorder %s224_s2, %s224_s2 }
  0x17   :  { %p288_p10 = scmp.lt.s32.totalorder %s286_s6, %s282_s3 }
  0x18   :  { %243 = vmatmul.mubr.msk.f32.vlgmr.msra.gmra.mrb[0].mxu0 %vm35_vm1, %v32_v4 }
  0x19   :  { %248 = vmatmul.mubr.msk.f32.vlgmr.msra.gmra.mrb[0].mxu1 %vm35_vm1, %v31_v6  ;;  %p289_p11 = por %p288_p10, %p287_p9 }
  0x1b   :  { %p290_p12 = pnand %p289_p11, %p283_p8 }
  0x95   :  { %v191_v10 = vpop.permute.xlu0 %190 }
  0xeb   :  { %v108_v7 = vpop.f32.mrb[0].mxu0 }
  0xec   :  { %v244_v8 = vpop.f32.mrb[1].mxu0  ;;  %v184_v9 = vpop.f32.mrb[0].mxu1 }
  0xed   :  { %v185_v11 = vadd.f32 %v184_v9, %v108_v7  ;;  %v249_v12 = vpop.f32.mrb[1].mxu1 }
  0xef   :  { %v193_v13 = vadd.f32 %v191_v10, %v185_v11 }
  0xf1   :  { %v195_v14 = vsel %vm194_vm2, %v193_v13, -inf }
  0xf2   :  { %v196_v15 = vrot.slane %v195_v14, 4 }
  0xf4   :  { %v197_v16 = vmax.f32 %v195_v14, %v196_v15 }
  0xf6   :  { %v198_v17 = vrot.slane %v197_v16, 2 }
  0xf8   :  { %v199_v18 = vmax.f32 %v197_v16, %v198_v17 }
  0xfa   :  { %v200_v19 = vrot.slane %v199_v18, 1 }
  0xfc   :  { %v201_v20 = vmax.f32 %v199_v18, %v200_v19 }
  0xfe   :  { %v202_v21 = vsub.f32 %v193_v13, %v201_v20 }
 0x100   :  { %v203_v22 = vmul.f32 1.442695, %v202_v21 }
 0x102   :  { %256 = vpow2.f32 %v203_v22 }
 0x10c   :  { %v257_v23 = vpop.eup %256 }
 0x10d   :  { %v205_v24 = vsel %vm194_vm2, %v257_v23, 0.0 }
 0x10e   :  { %v206_v25 = vrot.slane %v205_v24, 4 }
 0x110   :  { %v207_v26 = vadd.f32 %v206_v25, %v205_v24 }
 0x112   :  { %v208_v27 = vrot.slane %v207_v26, 2 }
 0x114   :  { %v209_v28 = vadd.f32 %v208_v27, %v207_v26 }
 0x116   :  { %v210_v29 = vrot.slane %v209_v28, 1 }
 0x118   :  { %v211_v30 = vadd.f32 %v210_v29, %v209_v28 }
 0x11a   :  { %258 = vlog2.f32 %v211_v30 }
 0x124   :  { %v259_v31 = vpop.eup %258 }
 0x125   :  { %v213_v32 = vmul.f32 0.6931472, %v259_v31 }
 0x127   :  { %v214_v33 = vadd.f32 %v213_v32, %v201_v20 }
 0x129   :  { %216 = vst.msk [vmem:[#allocation5] sm:$0x1] %vm215_vm3, %v214_v33 }
 0x12a   :  { %293 = shalt.err (!%p290_p12)
}
 0x12b   :  { %s294_s9 = scalar_lea.hbm %s375_s4, 16 }
 0x12c   :  { %p295_p13 = scmp.ne.s32.totalorder %s375_s4, %s294_s9  ;;  %p298_p0 = scmp.lt.u32.totalorder %s294_s9, %s375_s4 }
 0x12e   :  { %p300_p1 = pnand %p298_p0, %p295_p13 }
 0x130   :  { %303 = shalt.err (!%p300_p1)
}
 0x131   :  { %226 = dma.vmem_to_hbm [thread:$0]  %s224_s2, 16, %s375_s4, [#allocation4]  }
 0x132   :  { %306 = dma.done.wait [#allocation4], 16  }
 0x133   :  { %307 = vsyncadd [#allocation4], 4294967280 }
 0x134   :  { %230 = vsyncpa [#allocation3], 1 }
 0x135   :  { %231 = vsyncpa [#allocation4], 1 }

</bundles_post_ra>
